<compile_context>
chip_gen: v7x
topology: tpu7x:2x2x1
jax: 0.10.0
libtpu: 0.0.40
codegen_flags: <defaults>
</compile_context>

<pallas_src>
import math
from typing import NamedTuple

import jax
import jax.numpy as jnp
from jax.experimental import pallas as pl
from jax.experimental.pallas import tpu as pltpu

_LANE = 128
_SUBLANE = 8


def _round_up(x, m):
    return (x + m - 1) // m * m


def _vmem_capacity_bytes():
    try:
        info = pltpu.get_tpu_info()
        cap = getattr(info, "vmem_capacity_bytes", None)
        if cap:
            return int(cap)
    except Exception:
        pass
    return 64 << 20  # conservative default (v7x-sized)


def _chip_budgets():
    cap = _vmem_capacity_bytes()
    vmem_limit = max(32 << 20, min((cap * 3) // 4, 96 << 20))
    tile_budget = vmem_limit // 2
    # v7x heuristic: 64 MiB VMEM per TensorCore and 2 TCs/chip -> keep >=2
    # parallel grid steps so both cores get work.
    two_tc = cap <= (64 << 20)
    return vmem_limit, tile_budget, two_tc


def _pick_tile(dim, unit, cap):
    """Largest `unit`-aligned tile <= cap that minimizes padded extent of dim."""
    cap = max(unit, (cap // unit) * unit)
    hi = min(_round_up(dim, unit), cap)
    best_t, best_pad = hi, _round_up(dim, hi)
    t = hi
    while t >= unit:
        padded = _round_up(dim, t)
        if padded < best_pad or (padded == best_pad and t > best_t):
            best_t, best_pad = t, padded
        t -= unit
    return best_t


class _Plan(NamedTuple):
    tm: int
    tk: int
    tn: int
    eb: int
    Bp: int
    INp: int
    OUTp: int
    vmem_limit: int
    need_scratch: bool


def _make_plan(E, B, IN, OUT, x_dtype, w_dtype, b_dtype, out_dtype,
               tm_cap, tn_cap, tk_cap):
    vmem_limit, tile_budget, two_tc = _chip_budgets()
    x_it = jnp.dtype(x_dtype).itemsize
    w_it = jnp.dtype(w_dtype).itemsize
    b_it = jnp.dtype(b_dtype).itemsize
    o_it = jnp.dtype(out_dtype).itemsize
    need_scratch = jnp.dtype(out_dtype) != jnp.dtype(jnp.float32)

    # HBM-traffic-aware caps: total traffic ~ x*(OUT/tn) + w*(B/tm).  If the
    # weight stream dominates, grow tm toward B so weights are read once.
    if IN * OUT >= B * IN:
        tm_cap = max(tm_cap, min(_round_up(B, _SUBLANE), 1024))
    else:
        tn_cap = max(tn_cap, min(_round_up(OUT, _LANE), 1024))

    tm = _pick_tile(B, _SUBLANE, tm_cap)
    tk = _pick_tile(IN, _LANE, tk_cap)
    tn = _pick_tile(OUT, _LANE, tn_cap)

    def fp(eb, tm_, tk_, tn_):
        dbuf = 2 * eb * (tm_ * tk_ * x_it + tk_ * tn_ * w_it
                         + tn_ * b_it + tm_ * tn_ * o_it)
        acc = eb * tm_ * tn_ * 4 if need_scratch else 0
        return dbuf + acc

    # Shrink until a single-member tile set fits the double-buffered budget.
    order = ("tk", "tn", "tm")
    i = 0
    while fp(1, tm, tk, tn) > tile_budget and (tk > _LANE or tn > _LANE or tm > _SUBLANE):
        name = order[i % 3]
        i += 1
        if name == "tk" and tk > _LANE:
            tk = _round_up(tk // 2, _LANE)
        elif name == "tn" and tn > _LANE:
            tn = _round_up(tn // 2, _LANE)
        elif name == "tm" and tm > _SUBLANE:
            tm = _round_up(tm // 2, _SUBLANE)
    assert fp(1, tm, tk, tn) <= vmem_limit, (
        "EnsembledLinear tiles exceed the VMEM limit even at minimal size")

    Bp = _round_up(B, tm)
    INp = _round_up(IN, tk)
    OUTp = _round_up(OUT, tn)
    mn_steps = (Bp // tm) * (OUTp // tn)

    eb = 1
    for cand in range(1, min(E, 8) + 1):
        if E % cand:
            continue
        if fp(cand, tm, tk, tn) > tile_budget:
            continue
        # v7x: keep at least 2 parallel grid steps so both TensorCores work.
        if two_tc and E >= 2 and (E // cand) * mn_steps < 2:
            continue
        eb = cand

    return _Plan(tm, tk, tn, eb, Bp, INp, OUTp, vmem_limit, need_scratch)


def _kernel_f32_out(x_ref, w_ref, b_ref, o_ref):
    # f32 output: accumulate directly into the VMEM-resident output block.
    # x_ref: (eb, tm, tk)  w_ref: (eb, tk, tn)  b_ref: (eb, 1, tn)  o_ref: (eb, tm, tn)
    k = pl.program_id(3)
    eb = o_ref.shape[0]

    @pl.when(k == 0)
    def _init():
        o_ref[...] = jnp.broadcast_to(b_ref[...], o_ref.shape).astype(o_ref.dtype)

    for e in range(eb):  # static unroll: clean (tm,tk)x(tk,tn) MXU matmuls
        o_ref[e] += jnp.dot(x_ref[e], w_ref[e], preferred_element_type=jnp.float32)


def _kernel_acc_out(x_ref, w_ref, b_ref, o_ref, acc_ref):
    # Low-precision output: f32 scratch accumulator, cast on the last K step.
    k = pl.program_id(3)
    eb = o_ref.shape[0]

    @pl.when(k == 0)
    def _init():
        acc_ref[...] = jnp.broadcast_to(
            b_ref[...].astype(jnp.float32), acc_ref.shape)

    for e in range(eb):
        acc_ref[e] += jnp.dot(x_ref[e], w_ref[e], preferred_element_type=jnp.float32)

    @pl.when(k == pl.num_programs(3) - 1)
    def _finalize():
        o_ref[...] = acc_ref[...].astype(o_ref.dtype)


def _pallas_forward(xp, wp, bp, plan, out_dtype):
    E, Bp, INp = xp.shape
    OUTp = wp.shape[2]
    tm, tk, tn, eb = plan.tm, plan.tk, plan.tn, plan.eb
    grid = (E // eb, Bp // tm, OUTp // tn, INp // tk)

    if plan.need_scratch:
        kernel = _kernel_acc_out
        scratch = [pltpu.VMEM((eb, tm, tn), jnp.float32)]
    else:
        kernel = _kernel_f32_out
        scratch = []

    cost = pl.CostEstimate(
        flops=2 * E * Bp * INp * OUTp,
        transcendentals=0,
        bytes_accessed=(E * Bp * INp * xp.dtype.itemsize
                        + E * INp * OUTp * wp.dtype.itemsize
                        + E * OUTp * bp.dtype.itemsize
                        + E * Bp * OUTp * jnp.dtype(out_dtype).itemsize),
    )

    return pl.pallas_call(
        kernel,
        out_shape=jax.ShapeDtypeStruct((E, Bp, OUTp), out_dtype),
        grid_spec=pltpu.PrefetchScalarGridSpec(
            num_scalar_prefetch=0,
            grid=grid,
            in_specs=[
                pl.BlockSpec((eb, tm, tk), lambda e, m, n, k: (e, m, k)),
                pl.BlockSpec((eb, tk, tn), lambda e, m, n, k: (e, k, n)),
                pl.BlockSpec((eb, 1, tn), lambda e, m, n, k: (e, 0, n)),
            ],
            out_specs=pl.BlockSpec((eb, tm, tn), lambda e, m, n, k: (e, m, n)),
            scratch_shapes=scratch,
        ),
        compiler_params=pltpu.CompilerParams(
            dimension_semantics=("parallel", "parallel", "parallel", "arbitrary"),
            vmem_limit_bytes=int(plan.vmem_limit),
        ),
        cost_estimate=cost,
    )(xp, wp, bp)


class EnsembledLinear:
    """Pallas TPU EnsembledLinear: out = x @ weight + bias.

    Pads weight/bias once (cached) so the per-call path only pads x and
    launches the kernel.  Optionally stores weights in bfloat16 for the
    memory-bound small-batch regime (f32 accumulation is kept)."""

    def __init__(self, weight, bias, *, weight_dtype=None,
                 tm_cap=512, tn_cap=512, tk_cap=1024):
        E, IN, OUT = weight.shape
        assert bias.shape == (E, 1, OUT)
        self.ensemble_size, self.in_features, self.out_features = E, IN, OUT
        self._caps = (tm_cap, tn_cap, tk_cap)
        self._weight = weight if weight_dtype is None else weight.astype(weight_dtype)
        self._bias = bias
        self._plans = {}          # (B, x_dtype) -> _Plan
        self._padded_params = {}  # (INp, OUTp)  -> (w_padded, b_padded)

    def __call__(self, x):
        E, B, IN = x.shape
        assert E == self.ensemble_size and IN == self.in_features
        OUT = self.out_features
        out_dtype = x.dtype

        pkey = (B, jnp.dtype(x.dtype).name)
        plan = self._plans.get(pkey)
        if plan is None:
            tm_cap, tn_cap, tk_cap = self._caps
            plan = _make_plan(E, B, IN, OUT, x.dtype, self._weight.dtype,
                              self._bias.dtype, out_dtype, tm_cap, tn_cap, tk_cap)
            self._plans[pkey] = plan

        wkey = (plan.INp, plan.OUTp)
        params = self._padded_params.get(wkey)
        if params is None:
            w, b = self._weight, self._bias
            if (plan.INp, plan.OUTp) != (IN, OUT):
                w = jnp.pad(w, ((0, 0), (0, plan.INp - IN), (0, plan.OUTp - OUT)))
            if plan.OUTp != OUT:
                b = jnp.pad(b, ((0, 0), (0, 0), (0, plan.OUTp - OUT)))
            params = (w, b)
            self._padded_params[wkey] = params
        wp, bp = params

        xp = x
        if (plan.Bp, plan.INp) != (B, IN):
            xp = jnp.pad(x, ((0, 0), (0, plan.Bp - B), (0, plan.INp - IN)))

        out = _pallas_forward(xp, wp, bp, plan, out_dtype)
        if (plan.Bp, plan.OUTp) != (B, OUT):
            out = out[:, :B, :OUT]
        return out


def ensembled_linear(x, weight, bias, **kwargs):
    """One-shot functional form (pads weight per call; prefer the class for reuse)."""
    return EnsembledLinear(weight, bias, **kwargs)(x)


def init_params(key, in_features, out_features, ensemble_size, dtype=jnp.float32):
    """Deterministic init mirroring EnsembledLinear.reset_parameters.

    Reproduces PyTorch's quirk: for a weight stored as (in, out),
    _calculate_fan_in_and_fan_out returns fan_in = out_features, so
    bound = 1/sqrt(out_features) for both weight and bias."""
    kw, kb = jax.random.split(key)
    fan_in = out_features
    bound = 1.0 / math.sqrt(fan_in) if fan_in > 0 else 0.0
    weight = jax.random.uniform(
        kw, (ensemble_size, in_features, out_features), dtype,
        minval=-bound, maxval=bound)
    bias = jax.random.uniform(
        kb, (ensemble_size, 1, out_features), dtype,
        minval=-bound, maxval=bound)
    return weight, bias


if __name__ == "__main__":
    key = jax.random.PRNGKey(0)

    # Case 1: demo-scale f32 (direct accumulation into the output block).
    E, B, IN, OUT = 4, 8, 32, 32
    kx, kp, krest = jax.random.split(key, 3)
    x = jax.random.normal(kx, (E, B, IN), jnp.float32)
    weight, bias = init_params(kp, IN, OUT, E)
    out = ensembled_linear(x, weight, bias)
    jax.block_until_ready(out)
    ref = jnp.einsum("ebi,eio->ebo", x, weight) + bias
    assert out.shape == (E, B, OUT)
    assert jnp.allclose(out, ref, atol=1e-5, rtol=1e-5)

    # Case 2: unaligned dims + forced multi-tile K/N; module called twice to
    # exercise the cached (pre-padded) parameter path.
    E2, B2, IN2, OUT2 = 3, 5, 200, 150
    kx2, kp2, krest = jax.random.split(krest, 3)
    x2 = jax.random.normal(kx2, (E2, B2, IN2), jnp.float32)
    w2, b2 = init_params(kp2, IN2, OUT2, E2)
    layer2 = EnsembledLinear(w2, b2, tk_cap=128, tn_cap=128)
    out2 = layer2(x2)
    out2 = layer2(x2)  # hits plan + padded-param cache
    jax.block_until_ready(out2)
    ref2 = jnp.einsum("ebi,eio->ebo", x2, w2) + b2
    assert out2.shape == (E2, B2, OUT2)
    assert jnp.allclose(out2, ref2, atol=1e-4, rtol=1e-4)

    # Case 3: bfloat16 end-to-end (f32 scratch accumulator, bf16 output).
    E3, B3, IN3, OUT3 = 2, 16, 128, 256
    kx3, kp3 = jax.random.split(krest)
    x3 = jax.random.normal(kx3, (E3, B3, IN3), jnp.float32).astype(jnp.bfloat16)
    w3, b3 = init_params(kp3, IN3, OUT3, E3, dtype=jnp.bfloat16)
    out3 = ensembled_linear(x3, w3, b3)
    jax.block_until_ready(out3)
    ref3 = (jnp.einsum("ebi,eio->ebo", x3.astype(jnp.float32), w3.astype(jnp.float32))
            + b3.astype(jnp.float32))
    assert out3.shape == (E3, B3, OUT3)
    assert jnp.allclose(out3.astype(jnp.float32), ref3, atol=2e-2, rtol=2e-2)

    print("KERNEL_OK")
</pallas_src>

<mosaic_0001>
module attributes {stable_mosaic.version = 11 : i64} {
  func.func @_kernel_f32_out(%arg0: i32, %arg1: i32, %arg2: i32, %arg3: i32, %arg4: memref<2x8x128xf32, #tpu.memory_space<vmem>>, %arg5: memref<2x128x128xf32, #tpu.memory_space<vmem>>, %arg6: memref<2x1x128xf32, #tpu.memory_space<vmem>>, %arg7: memref<2x8x128xf32, #tpu.memory_space<vmem>>) attributes {dimension_semantics = [#tpu.dimension_semantics<parallel>, #tpu.dimension_semantics<parallel>, #tpu.dimension_semantics<parallel>, #tpu.dimension_semantics<arbitrary>], iteration_bounds = array<i64: 2, 1, 1, 1>, scalar_prefetch = 0 : i64, scratch_operands = 0 : i64, tpu.core_type = #tpu.core_type<tc>, window_params = [{transform_indices = @transform_0, window_bounds = array<i64: 2, 8, 128>}, {transform_indices = @transform_1, window_bounds = array<i64: 2, 128, 128>}, {transform_indices = @transform_2, window_bounds = array<i64: 2, 1, 128>}, {transform_indices = @transform_3, window_bounds = array<i64: 2, 8, 128>}]} {
    %c0_i32 = arith.constant 0 : i32
    %0 = arith.cmpi eq, %arg3, %c0_i32 : i32
    %1 = arith.extui %0 : i1 to i32
    %c0_i32_0 = arith.constant 0 : i32
    %2 = arith.cmpi ne, %1, %c0_i32_0 : i32
    scf.if %2 {
      %c0_24 = arith.constant 0 : index
      %c0_25 = arith.constant 0 : index
      %c0_26 = arith.constant 0 : index
      %25 = vector.load %arg6[%c0_24, %c0_25, %c0_26] : memref<2x1x128xf32, #tpu.memory_space<vmem>>, vector<2x1x128xf32>
      %26 = vector.shape_cast %25 : vector<2x1x128xf32> to vector<2x1x128xf32>
      %27 = vector.broadcast %26 : vector<2x1x128xf32> to vector<2x8x128xf32>
      %c0_27 = arith.constant 0 : index
      %c0_28 = arith.constant 0 : index
      %c0_29 = arith.constant 0 : index
      %28 = vector.load %arg7[%c0_27, %c0_28, %c0_29] : memref<2x8x128xf32, #tpu.memory_space<vmem>>, vector<2x8x128xf32>
      tpu.vector_store %arg7[%c0_27, %c0_28, %c0_29], %27 {strides = array<i32>} : memref<2x8x128xf32, #tpu.memory_space<vmem>>, vector<2x8x128xf32>,
    } else {
    }
    %c0 = arith.constant 0 : index
    %c0_1 = arith.constant 0 : index
    %c0_2 = arith.constant 0 : index
    %3 = vector.load %arg7[%c0, %c0_1, %c0_2] : memref<2x8x128xf32, #tpu.memory_space<vmem>>, vector<1x8x128xf32>
    %4 = vector.shape_cast %3 : vector<1x8x128xf32> to vector<8x128xf32>
    %c0_3 = arith.constant 0 : index
    %c0_4 = arith.constant 0 : index
    %c0_5 = arith.constant 0 : index
    %5 = vector.load %arg4[%c0_3, %c0_4, %c0_5] : memref<2x8x128xf32, #tpu.memory_space<vmem>>, vector<1x8x128xf32>
    %6 = vector.shape_cast %5 : vector<1x8x128xf32> to vector<8x128xf32>
    %c0_6 = arith.constant 0 : index
    %c0_7 = arith.constant 0 : index
    %c0_8 = arith.constant 0 : index
    %7 = vector.load %arg5[%c0_6, %c0_7, %c0_8] : memref<2x128x128xf32, #tpu.memory_space<vmem>>, vector<1x128x128xf32>
    %8 = vector.shape_cast %7 : vector<1x128x128xf32> to vector<128x128xf32>
    %cst = arith.constant dense<0.000000e+00> : vector<8x128xf32>
    %9 = tpu.matmul %6, %8, %cst {dimension_numbers = #tpu.dot_dimension_numbers<[1], [0], [0], [1], [0, 0, 1, 1], [], []>} : vector<8x128xf32>, vector<128x128xf32>, vector<8x128xf32> -> vector<8x128xf32>
    %10 = arith.addf %4, %9 : vector<8x128xf32>
    %c0_9 = arith.constant 0 : index
    %c0_10 = arith.constant 0 : index
    %c0_11 = arith.constant 0 : index
    %11 = vector.load %arg7[%c0_9, %c0_10, %c0_11] : memref<2x8x128xf32, #tpu.memory_space<vmem>>, vector<1x8x128xf32>
    %12 = vector.shape_cast %11 : vector<1x8x128xf32> to vector<8x128xf32>
    %13 = vector.shape_cast %10 : vector<8x128xf32> to vector<1x8x128xf32>
    tpu.vector_store %arg7[%c0_9, %c0_10, %c0_11], %13 {strides = array<i32>} : memref<2x8x128xf32, #tpu.memory_space<vmem>>, vector<1x8x128xf32>,
    %c1 = arith.constant 1 : index
    %c0_12 = arith.constant 0 : index
    %c0_13 = arith.constant 0 : index
    %14 = vector.load %arg7[%c1, %c0_12, %c0_13] : memref<2x8x128xf32, #tpu.memory_space<vmem>>, vector<1x8x128xf32>
    %15 = vector.shape_cast %14 : vector<1x8x128xf32> to vector<8x128xf32>
    %c1_14 = arith.constant 1 : index
    %c0_15 = arith.constant 0 : index
    %c0_16 = arith.constant 0 : index
    %16 = vector.load %arg4[%c1_14, %c0_15, %c0_16] : memref<2x8x128xf32, #tpu.memory_space<vmem>>, vector<1x8x128xf32>
    %17 = vector.shape_cast %16 : vector<1x8x128xf32> to vector<8x128xf32>
    %c1_17 = arith.constant 1 : index
    %c0_18 = arith.constant 0 : index
    %c0_19 = arith.constant 0 : index
    %18 = vector.load %arg5[%c1_17, %c0_18, %c0_19] : memref<2x128x128xf32, #tpu.memory_space<vmem>>, vector<1x128x128xf32>
    %19 = vector.shape_cast %18 : vector<1x128x128xf32> to vector<128x128xf32>
    %cst_20 = arith.constant dense<0.000000e+00> : vector<8x128xf32>
    %20 = tpu.matmul %17, %19, %cst_20 {dimension_numbers = #tpu.dot_dimension_numbers<[1], [0], [0], [1], [0, 0, 1, 1], [], []>} : vector<8x128xf32>, vector<128x128xf32>, vector<8x128xf32> -> vector<8x128xf32>
    %21 = arith.addf %15, %20 : vector<8x128xf32>
    %c1_21 = arith.constant 1 : index
    %c0_22 = arith.constant 0 : index
    %c0_23 = arith.constant 0 : index
    %22 = vector.load %arg7[%c1_21, %c0_22, %c0_23] : memref<2x8x128xf32, #tpu.memory_space<vmem>>, vector<1x8x128xf32>
    %23 = vector.shape_cast %22 : vector<1x8x128xf32> to vector<8x128xf32>
    %24 = vector.shape_cast %21 : vector<8x128xf32> to vector<1x8x128xf32>
    tpu.vector_store %arg7[%c1_21, %c0_22, %c0_23], %24 {strides = array<i32>} : memref<2x8x128xf32, #tpu.memory_space<vmem>>, vector<1x8x128xf32>,
    return
  }
  func.func @transform_0(%arg0: i32, %arg1: i32, %arg2: i32, %arg3: i32) -> (i32, i32, i32) {
    %c0_i32 = arith.constant 0 : i32
    return %arg0, %arg1, %arg3 : i32, i32, i32
  }
  func.func @transform_1(%arg0: i32, %arg1: i32, %arg2: i32, %arg3: i32) -> (i32, i32, i32) {
    %c0_i32 = arith.constant 0 : i32
    return %arg0, %arg3, %arg2 : i32, i32, i32
  }
  func.func @transform_2(%arg0: i32, %arg1: i32, %arg2: i32, %arg3: i32) -> (i32, i32, i32) {
    %c0_i32 = arith.constant 0 : i32
    %c0_i32_0 = arith.constant 0 : i32
    return %arg0, %c0_i32, %arg2 : i32, i32, i32
  }
  func.func @transform_3(%arg0: i32, %arg1: i32, %arg2: i32, %arg3: i32) -> (i32, i32, i32) {
    %c0_i32 = arith.constant 0 : i32
    return %arg0, %arg1, %arg2 : i32, i32, i32
  }
}

</mosaic_0001>

<bundles_post_ra>
// kernel: tpu_custom_call.1
= control target key start
LH: loop header
LB: loop body
LE: loop exit
PB: predicated region body
PF: predicated region fallthrough
CT: control target
= control target key end

     0   :  { %8 = vsyncpa [#allocation3], 0  ;;  %s1401_s0 = inlined_call_operand.hbm [shape: f32[4,8,128], index: 0, kind: input, shape index: {}]   ;;  %s1402_s1 = inlined_call_operand.hbm [shape: f32[4,128,128], index: 1, kind: input, shape index: {}]   ;;  %s1403_s2 = inlined_call_operand.vmem [shape: f32[4,1,128], index: 2, kind: input, shape index: {}]   ;;  %s1404_s3 = inlined_call_operand.hbm [shape: f32[4,8,128], index: 3, kind: output, shape index: {}]  }
   0x1   :  { %10 = vsyncpa [#allocation3 + $0x1], 0 }
   0x2   :  { %11 = vsyncpa [#allocation6], 0 }
   0x3   :  { %13 = vsyncpa [#allocation6 + $0x1], 0 }
   0x4   :  { %14 = vsyncpa [#allocation4], 0 }
   0x5   :  { %16 = vsyncpa [#allocation4 + $0x1], 0  ;;  %s1108_s12 = smov 0   ;;  %s1110_s13 = smov 0  }
   0x6   :  { %s1112_s14 = smov 0   ;;  %s1114_s15 = smov 0  }
   0x7   :  { %s1116_s16 = smov 0   ;;  %s1118_s17 = smov 0  }
   0x8 LB: > { %s658_s18 = sadd.s32 4294967295, %s1076_s17   ;;  %s659_s19 = sadd.s32 4294967294, %s1076_s17   ;;  %s1076_s17 = sphi %s1118_s17, %s22_s17   ;;  %s1072_s16 = sphi %s1116_s16, %s1422_s16   ;;  %s1068_s15 = sphi %s1114_s15, %s1421_s15   ;;  %s1064_s14 = sphi %s1112_s14, %s1420_s14   ;;  %s1060_s13 = sphi %s1110_s13, %s1419_s13   ;;  %s1056_s12 = sphi %s1108_s12, %s1418_s12  }
   0x9   : > { %s48_s20 = sadd.s32 1, %s1072_s16  ;;  %s59_s21 = sadd.s32 1, %s1064_s14 }
   0xa   : > { %p50_p0 = scmp.ge.s32.totalorder %s48_s20, 2  ;;  %p66_p1 = scmp.ne.s32.totalorder %s1064_s14, %s1060_s13 }
   0xb   : > { %p67_p2 = scmp.eq.s32.totalorder %s1076_s17, 0  ;;  %p72_p3 = scmp.ne.s32.totalorder %s1060_s13, %s1056_s12 }
   0xc   : > { %s1424_s20 = smov (%p50_p0, %s48_s20), 0  ;;  %p73_p5 = scmp.eq.s32.totalorder %s658_s18, 0 }
   0xd   : > { %p1149_p4 = por %p67_p2, %p66_p1  ;;  %s52_s23 = ssub.s32 %s1072_s16, %s1424_s20 }
   0xe   : > { %p158_p6 = scmp.eq.s32.totalorder %s658_s18, 1  ;;  %p57_p7 = scmp.eq.s32.totalorder %s52_s23, 0 }
   0xf   : > { %p1155_p8 = por %p73_p5, %p72_p3  ;;  %p164_p10 = scmp.eq.s32.totalorder %s659_s19, 1 }
  0x10   : > { %p1159_p9 = por %p158_p6, %p66_p1  ;;  %p873_p13 = scmp.lt.s32.totalorder %s1076_s17, 2 }
  0x11   : > { %s1408_s24 = scalar_select %p1155_p8, 1, 0 }
  0x12   : > { %s1409_s25 = scalar_select %p1159_p9, 1, 0 }
  0x13   : > { %s1164_s26 = scalar_select %p57_p7, %s1064_s14, %s59_s21  }
  0x14   : > { %p1166_p11 = por %p164_p10, %p72_p3  ;;  %s1173_s28 = sand.u32 1, %s1064_s14  }
  0x15   : > { %s662_s29 = sshll.u32 %s1173_s28, 4  ;;  %s700_s30 = sshll.u32 %s1072_s16, 8 }
  0x16   : > { %s1410_s27 = scalar_select %p1166_p11, 1, 0 }
  0x17   : > { %s1180_s6 = scalar_lea.hbm %s1401_s0, %s700_s30  ;;  %s188_s7 = scalar_lea.vmem [#allocation2], %s662_s29 }
  0x18   : > { %s197_s8 = sshll.u32 %s188_s7, 4  ;;  %p1186_p0 = pnand %p873_p13, %p1149_p4  ;;  %s1182_s8 = int_to_ptr.vmem [resolvable:$true] %s197_s8 }
  0x19   : > { %s185_s10 = scalar_lea.sflag [#allocation3], %s1173_s28  ;;  %s930_s11 = scalar_lea.hbm %s1180_s6, 256 }
  0x1a   : > { %p931_p2 = scmp.ne.s32.totalorder %s1180_s6, %s930_s11  ;;  %p932_p3 = pneg %p1186_p0 }
  0x1b   : > { %s935_s21 = scalar_lea.hbm %s1401_s0, 512  ;;  %p936_p4 = scmp.lt.u32.totalorder %s1180_s6, %s1401_s0 }
  0x1c   : > { %p933_p5 = pnand %p932_p3, %p931_p2  ;;  %p937_p7 = scmp.lt.u32.totalorder %s935_s21, %s930_s11 }
  0x1d   : > { %p939_p13 = scmp.lt.u32.totalorder %s930_s11, %s1180_s6 }
  0x1e   : > { %p934_p6 = pneg %p933_p5  ;;  %p938_p10 = por %p937_p7, %p936_p4 }
  0x20   : > { %p940_p12 = por %p939_p13, %p938_p10 }
  0x22   : > { %p941_p1 = pnand %p940_p12, %p934_p6 }
  0x24   : > { %944 = shalt.err (!%p941_p1)
}
  0x25   : > { %s945_s29 = scalar_lea.vmem %s1182_s8, 256  ;;  %s1078_s30 = smov [#allocation2]  }
  0x26   : > { %p946_p2 = scmp.ne.s32.totalorder %s1182_s8, %s945_s29  ;;  %s950_s4 = sshll.u32 %s1078_s30, 4  ;;  %s951_s4 = int_to_ptr.vmem [resolvable:$false] %s950_s4 }
  0x27   : > { %s952_s5 = scalar_lea.vmem %s951_s4, 512  ;;  %p953_p9 = scmp.lt.s32.totalorder %s1182_s8, %s951_s4 }
  0x28   : > { %p948_p5 = pnand %p946_p2, %p932_p3  ;;  %p954_p4 = scmp.lt.s32.totalorder %s952_s5, %s945_s29 }
  0x2a   : > { %p949_p11 = pneg %p948_p5  ;;  %p955_p7 = por %p954_p4, %p953_p9 }
  0x2c   : > { %p956_p10 = pnand %p955_p7, %p949_p11 }
  0x2e   : > { %959 = shalt.err (!%p956_p10)
}
  0x2f   : > { %s1079_s7 = smov 128   ;;  %s1080_s11 = smov 8  }
  0x30   : > { %865 = dma.hbm_to_vmem [thread:$0]  (!%p1186_p0), %s1180_s6, 256, %s1182_s8, %s185_s10, %s1079_s7, %s1079_s7, %s1080_s11  }
  0x31   : > { %p241_p9 = scmp.lt.s32.totalorder %s1076_s17, 3  ;;  %s665_s18 = sshll.u32 %s1173_s28, 8 }
  0x32   : > { %s702_s19 = sshll.u32 %s1072_s16, 12  ;;  %p1412_p11 = scmp.ge.s32.totalorder %s1076_s17, 1 }
  0x33   : > { %s1234_s29 = scalar_lea.hbm %s1402_s1, %s702_s19  ;;  %s211_s30 = scalar_lea.vmem [#allocation5], %s665_s18 }
  0x34   : > { %p1227_p12 = pnand %p1412_p11, %p241_p9  ;;  %s222_s4 = sshll.u32 %s211_s30, 4  ;;  %s1236_s4 = int_to_ptr.vmem [resolvable:$true] %s222_s4 }
  0x35   : > { %s208_s6 = scalar_lea.sflag [#allocation6], %s1173_s28  ;;  %s960_s8 = scalar_lea.hbm %s1234_s29, 4096 }
  0x36   : > { %p961_p1 = scmp.ne.s32.totalorder %s1234_s29, %s960_s8  ;;  %s965_s19 = scalar_lea.hbm %s1402_s1, 8192 }
  0x37   : > { %p966_p2 = scmp.lt.u32.totalorder %s1234_s29, %s1402_s1  ;;  %p967_p5 = scmp.lt.u32.totalorder %s965_s19, %s960_s8 }
  0x38   : > { %p963_p6 = pnand %p961_p1, %p932_p3  ;;  %p969_p7 = scmp.lt.u32.totalorder %s960_s8, %s1234_s29 }
  0x39   : > { %p968_p4 = por %p967_p5, %p966_p2 }
  0x3a   : > { %p964_p13 = pneg %p963_p6 }
  0x3b   : > { %p970_p10 = por %p969_p7, %p968_p4 }
  0x3d   : > { %p971_p9 = pnand %p970_p10, %p964_p13 }
  0x3f   : > { %974 = shalt.err (!%p971_p9)
}
  0x40   : > { %s975_s18 = scalar_lea.vmem %s1236_s4, 4096  ;;  %s1081_s30 = smov [#allocation5]  }
  0x41   : > { %p976_p11 = scmp.ne.s32.totalorder %s1236_s4, %s975_s18  ;;  %s980_s10 = sshll.u32 %s1081_s30, 4  ;;  %s981_s10 = int_to_ptr.vmem [resolvable:$false] %s980_s10 }
  0x42   : > { %s982_s5 = scalar_lea.vmem %s981_s10, 8192  ;;  %p983_p8 = scmp.lt.s32.totalorder %s1236_s4, %s981_s10 }
  0x43   : > { %p978_p1 = pnand %p976_p11, %p932_p3  ;;  %p984_p2 = scmp.lt.s32.totalorder %s982_s5, %s975_s18 }
  0x45   : > { %p979_p6 = pneg %p978_p1  ;;  %p985_p5 = por %p984_p2, %p983_p8 }
  0x47   : > { %p986_p4 = pnand %p985_p5, %p979_p6 }
  0x49   : > { %989 = shalt.err (!%p986_p4)
}
  0x4a   : > { %868 = dma.hbm_to_vmem [thread:$0]  (!%p1186_p0), %s1234_s29, 4096, %s1236_s4, %s208_s6, %s1079_s7, %s1079_s7, %s1080_s11  }
  0x4b   : > { %245 = sbr.rel (%p1227_p12) target bundleno = 350 (0x15e), region = 32  ;;  %s1270_s8 = sand.u32 (!%p1227_p12), 1, %s1060_s13  }
  0x4c   : > { %s670_s19 = sshll.u32 (!%p1227_p12), %s1270_s8, 4  ;;  %s248_s9 = scalar_lea.sflag (!%p1227_p12), [#allocation3], %s1270_s8 }
  0x4d   : > { %s1276_s22 = scalar_lea.vmem (!%p1227_p12), [#allocation2], %s670_s19  ;;  %p1414_p8 = scmp.ne.s32.totalorder (!%p1227_p12), %s1408_s24, 0 }
  0x52   : > { %1043 = dma.done.wait (%p1414_p8), %s248_s9, 256  }
  0x53   : > { %1045 = vsyncadd (%p1414_p8), %s248_s9, 4294967040  ;;  %s671_s28 = sshll.u32 %s1270_s8, 8  ;;  %s257_s7 = scalar_lea.sflag [#allocation6], %s1270_s8 }
  0x54   : > { %s1284_s11 = scalar_lea.vmem [#allocation5], %s671_s28 }
  0x55   : > { %1047 = dma.done.wait (%p1414_p8), %s257_s7, 4096  }
  0x56   : > { %1049 = vsyncadd (%p1414_p8), %s257_s7, 4294963200  ;;  %v1082_v0 = vmov 0.0|0.0   ;;  %vm1083_vm0 = vmmov 0   ;;  %v1084_v1 = vmov 0.0   ;;  %v329_v2 = vld [vmem:[%s1284_s11] sm:$0xff]  ;;  %v330_v3 = vld [vmem:[%s1284_s11 + $0x8] sm:$0xff] }
  0x57   : > { %808 = vmatprep.subr.bf16.mxu0 %v1082_v0  ;;  %832 = vmatprep.subr.bf16.mxu1 %v1082_v0  ;;  %v678_v4 = vld [vmem:[%s1284_s11 + $0x80] sm:$0xff]  ;;  %v809_v5 = vpack.c.bf16 %v330_v3, %v329_v2  ;;  %v679_v6 = vld [vmem:[%s1284_s11 + $0x88] sm:$0xff]  ;;  %v331_v7 = vld [vmem:[%s1284_s11 + $0x10] sm:$0xff]  ;;  %s673_s24 = sshll.u32 %s1068_s15, 1  ;;  %s703_s6 = sshll.u32 %s1068_s15, 8 }
  0x58   : > { %770 = vmatprep.mubr.msk.f32.mxu0 %vm1083_vm0, %v1084_v1  ;;  %805 = vmatprep.mubr.msk.f32.mxu1 %vm1083_vm0, %v1084_v1  ;;  %v332_v8 = vld [vmem:[%s1284_s11 + $0x18] sm:$0xff]  ;;  %v833_v9 = vpack.c.bf16 %v679_v6, %v678_v4  ;;  %v680_v10 = vld [vmem:[%s1284_s11 + $0x90] sm:$0xff]  ;;  %v333_v14 = vld [vmem:[%s1284_s11 + $0x20] sm:$0xff]  ;;  %p299_p0 = scmp.lt.s32.totalorder %s673_s24, 3  ;;  %s294_s23 = scalar_lea.vmem [#allocation7], %s670_s19 }
  0x59   : > { %v681_v11 = vld [vmem:[%s1284_s11 + $0x98] sm:$0xff]  ;;  %810 = vmatpush3.bf16.msra.mxu0 %v809_v5  ;;  %v812_v12 = vpack.c.bf16 %v332_v8, %v331_v7  ;;  %v334_v15 = vld [vmem:[%s1284_s11 + $0x28] sm:$0xff]  ;;  %v682_v16 = vld [vmem:[%s1284_s11 + $0xa0] sm:$0xff]  ;;  %s526_s18 = sshll.u32 %s294_s23, 4  ;;  %s1350_s5 = scalar_lea.hbm %s1404_s3, %s703_s6  ;;  %s1352_s18 = int_to_ptr.vmem [resolvable:$true] %s526_s18 }
  0x5a   : > { %834 = vmatpush3.bf16.msra.mxu1 %v833_v9  ;;  %811 = vmatprep.subr.bf16.mxu0 %v1082_v0  ;;  %v836_v13 = vpack.c.bf16 %v681_v11, %v680_v10  ;;  %v683_v17 = vld [vmem:[%s1284_s11 + $0xa8] sm:$0xff]  ;;  %v815_v18 = vpack.c.bf16 %v334_v15, %v333_v14  ;;  %v335_v20 = vld [vmem:[%s1284_s11 + $0x30] sm:$0xff]  ;;  %v336_v21 = vld [vmem:[%s1284_s11 + $0x38] sm:$0xff]  ;;  %s1426_s24 = smov (!%p299_p0, %s673_s24), 3  ;;  %s511_s15 = scalar_lea.sflag [#allocation4], %s1270_s8 }
  0x5b   : > { %835 = vmatprep.subr.bf16.mxu1 %v1082_v0  ;;  %v839_v19 = vpack.c.bf16 %v683_v17, %v682_v16  ;;  %v684_v22 = vld [vmem:[%s1284_s11 + $0xb0] sm:$0xff]  ;;  %v685_v23 = vld [vmem:[%s1284_s11 + $0xb8] sm:$0xff]  ;;  %v818_v24 = vpack.c.bf16 %v336_v21, %v335_v20  ;;  %v337_v26 = vld [vmem:[%s1284_s11 + $0x40] sm:$0xff]  ;;  %s304_s4 = scalar_lea.vmem %s1403_s2, %s1426_s24  ;;  %s990_s19 = scalar_lea.vmem %s1352_s18, 256 }
  0x5c   : > { %v842_v25 = vpack.c.bf16 %v685_v23, %v684_v22  ;;  %v338_v27 = vld [vmem:[%s1284_s11 + $0x48] sm:$0xff]  ;;  %v686_v28 = vld [vmem:[%s1284_s11 + $0xc0] sm:$0xff]  ;;  %v339_v32 = vld [vmem:[%s1284_s11 + $0x50] sm:$0xff]  ;;  %p991_p3 = scmp.ne.s32.totalorder %s1352_s18, %s990_s19  ;;  %p1415_p12 = scmp.ne.s32.totalorder %s1409_s25, 0 }
  0x5d   : > { %813 = vmatpush3.bf16.msra.mxu0 %v812_v12  ;;  %v687_v29 = vld [vmem:[%s1284_s11 + $0xc8] sm:$0xff]  ;;  %v821_v30 = vpack.c.bf16 %v338_v27, %v337_v26  ;;  %v340_v33 = vld [vmem:[%s1284_s11 + $0x58] sm:$0xff]  ;;  %v688_v34 = vld [vmem:[%s1284_s11 + $0xd0] sm:$0xff]  ;;  %s1085_s9 = smov [#allocation7]  }
  0x5e   : > { %837 = vmatpush3.bf16.msra.mxu1 %v836_v13  ;;  %814 = vmatprep.subr.bf16.mxu0 %v1082_v0  ;;  %v845_v31 = vpack.c.bf16 %v687_v29, %v686_v28  ;;  %v689_v35 = vld [vmem:[%s1284_s11 + $0xd8] sm:$0xff]  ;;  %v824_v36 = vpack.c.bf16 %v340_v33, %v339_v32  ;;  %v341_v38 = vld [vmem:[%s1284_s11 + $0x60] sm:$0xff]  ;;  %v342_v39 = vld [vmem:[%s1284_s11 + $0x68] sm:$0xff]  ;;  %p992_p13 = pnand %p991_p3, %p1415_p12 }
  0x5f   : > { %838 = vmatprep.subr.bf16.mxu1 %v1082_v0  ;;  %v848_v37 = vpack.c.bf16 %v689_v35, %v688_v34  ;;  %v690_v40 = vld [vmem:[%s1284_s11 + $0xe0] sm:$0xff]  ;;  %v691_v41 = vld [vmem:[%s1284_s11 + $0xe8] sm:$0xff]  ;;  %v827_v42 = vpack.c.bf16 %v342_v39, %v341_v38  ;;  %v343_v44 = vld [vmem:[%s1284_s11 + $0x70] sm:$0xff] }
  0x60   : > { %v851_v43 = vpack.c.bf16 %v691_v41, %v690_v40  ;;  %v344_v45 = vld [vmem:[%s1284_s11 + $0x78] sm:$0xff]  ;;  %v692_v46 = vld [vmem:[%s1284_s11 + $0xf0] sm:$0xff]  ;;  %v674_v52 = vld [vmem:[%s304_s4] ss:$0 sm:$0xff]  ;;  %p993_p7 = pneg %p992_p13 }
  0x61   : > { %816 = vmatpush3.bf16.msra.mxu0 %v815_v18  ;;  %v693_v47 = vld [vmem:[%s1284_s11 + $0xf8] sm:$0xff]  ;;  %v830_v48 = vpack.c.bf16 %v344_v45, %v343_v44  ;;  %v328_v50 = vld [vmem:[%s1276_s22] sm:$0xff] }
  0x62   : > { %840 = vmatpush3.bf16.msra.mxu1 %v839_v19  ;;  %817 = vmatprep.subr.bf16.mxu0 %v1082_v0  ;;  %v854_v49 = vpack.c.bf16 %v693_v47, %v692_v46  ;;  %v677_v51 = vld [vmem:[%s1276_s22 + $0x8] sm:$0xff]  ;;  %v675_v53 = vld [vmem:[%s304_s4 + $0x1] ss:$0 sm:$0xff]  ;;  %s994_s22 = sshll.u32 %s1085_s9, 4  ;;  %s995_s22 = int_to_ptr.vmem [resolvable:$false] %s994_s22 }
  0x63   : > { %841 = vmatprep.subr.bf16.mxu1 %v1082_v0  ;;  %s996_s28 = scalar_lea.vmem %s995_s22, 512  ;;  %p997_p10 = scmp.lt.s32.totalorder %s1352_s18, %s995_s22 }
  0x64   : > { %p998_p9 = scmp.lt.s32.totalorder %s996_s28, %s990_s19 }
  0x65   : > { %819 = vmatpush3.bf16.msra.mxu0 %v818_v24 }
  0x66   : > { %843 = vmatpush3.bf16.msra.mxu1 %v842_v25  ;;  %820 = vmatprep.subr.bf16.mxu0 %v1082_v0  ;;  %p999_p11 = por %p998_p9, %p997_p10 }
  0x67   : > { %844 = vmatprep.subr.bf16.mxu1 %v1082_v0 }
  0x68   : > { %p1000_p1 = pnand %p999_p11, %p993_p7 }
  0x69   : > { %822 = vmatpush3.bf16.msra.mxu0 %v821_v30 }
  0x6a   : > { %846 = vmatpush3.bf16.msra.mxu1 %v845_v31  ;;  %823 = vmatprep.subr.bf16.mxu0 %v1082_v0 }
  0x6b   : > { %847 = vmatprep.subr.bf16.mxu1 %v1082_v0 }
  0x6d   : > { %825 = vmatpush3.bf16.msra.mxu0 %v824_v36 }
  0x6e   : > { %849 = vmatpush3.bf16.msra.mxu1 %v848_v37  ;;  %826 = vmatprep.subr.bf16.mxu0 %v1082_v0 }
  0x6f   : > { %850 = vmatprep.subr.bf16.mxu1 %v1082_v0 }
  0x71   : > { %828 = vmatpush3.bf16.msra.mxu0 %v827_v42 }
  0x72   : > { %852 = vmatpush3.bf16.msra.mxu1 %v851_v43  ;;  %829 = vmatprep.subr.bf16.mxu0 %v1082_v0 }
  0x73   : > { %853 = vmatprep.subr.bf16.mxu1 %v1082_v0 }
  0x75   : > { %831 = vmatpush3.bf16.msra.mxu0 %v830_v48 }
  0x76   : > { %855 = vmatpush3.bf16.msra.mxu1 %v854_v49 }
  0x78   : > { %771 = vmatmul.mubr.f32.vlgmr.msra.gmra.mrb[0].mxu0 %v328_v50 }
  0x79   : > { %806 = vmatmul.mubr.f32.vlgmr.msra.gmra.mrb[0].mxu1 %v677_v51 }
 0x14b   : > { %v411_v54 = vpop.f32.mrb[0].mxu0 }
 0x14c   : > { %v415_v55 = vadd.f32 %v674_v52, %v411_v54  ;;  %v504_v56 = vpop.f32.mrb[0].mxu1  ;;  %v772_v57 = vpop.f32.mrb[1].mxu0 }
 0x14d   : > { %v508_v58 = vadd.f32 %v675_v53, %v504_v56  ;;  %v807_v59 = vpop.f32.mrb[1].mxu1 }
 0x14e   : > { %416 = vst [vmem:[%s294_s23] sm:$0xff] %v415_v55 }
 0x14f   : > { %694 = vst [vmem:[%s294_s23 + $0x8] sm:$0xff] %v508_v58 }
 0x150   : > { %1003 = shalt.err (!%p1000_p1)
}
 0x151   : > { %s1004_s7 = scalar_lea.hbm %s1350_s5, 256  ;;  %s1008_s21 = scalar_lea.hbm %s1404_s3, 512 }
 0x152   : > { %p1005_p6 = scmp.ne.s32.totalorder %s1350_s5, %s1004_s7  ;;  %p1009_p4 = scmp.lt.u32.totalorder %s1350_s5, %s1404_s3 }
 0x153   : > { %p1010_p8 = scmp.lt.u32.totalorder %s1008_s21, %s1004_s7  ;;  %p1012_p3 = scmp.lt.u32.totalorder %s1004_s7, %s1350_s5 }
 0x154   : > { %p1006_p2 = pnand %p1005_p6, %p1415_p12 }
 0x155   : > { %p1011_p0 = por %p1010_p8, %p1009_p4 }
 0x156   : > { %p1007_p5 = pneg %p1006_p2 }
 0x157   : > { %p1013_p13 = por %p1012_p3, %p1011_p0 }
 0x159   : > { %p1014_p7 = pnand %p1013_p13, %p1007_p5 }
 0x15b   : > { %1017 = shalt.err (!%p1014_p7)
}
 0x15c   : > { %s1086_s6 = smov 128   ;;  %s1087_s23 = smov 8  }
 0x15d   : > { %860 = dma.vmem_to_hbm [thread:$0]  (%p1415_p12), %s1352_s18, 256, %s1350_s5, %s511_s15, %s1086_s6, %s1086_s6, %s1087_s23  }
 0x15e PF: > { %s541_s30 = sand.u32 1, %s1056_s12   ;;  %p1416_p10 = scmp.ne.s32.totalorder %s1410_s27, 0 }
 0x15f   : > { %p1417_p9 = scmp.ge.s32.totalorder %s1076_s17, 2  ;;  %s542_s10 = scalar_lea.sflag [#allocation4], %s541_s30 }
 0x161   : > { %p870_p11 = pnand %p1417_p9, %p1416_p10 }
 0x163   : > { %1051 = dma.done.wait (!%p870_p11), %s542_s10, 256  }
 0x164   : > { %1053 = vsyncadd (!%p870_p11), %s542_s10, 4294967040  ;;  %s22_s17 = sadd.s32 1, %s1076_s17   ;;  %s1418_s12 = smov %s1060_s13 }
 0x165   : > { %p19_p1 = scmp.ge.s32.totalorder %s22_s17, 4   ;;  %s1419_s13 = smov %s1064_s14 }
 0x166   : > { %s1420_s14 = smov %s1164_s26  ;;  %s1421_s15 = smov %s1072_s16 }
 0x167   : > { %s1422_s16 = smov %s1424_s20  ;;  %21 = sbr.rel (!%p19_p1) target bundleno = 8 (0x8), region = 100 }
 0x16e   :  { %547 = vsyncpa [#allocation3], 1 }
 0x16f   :  { %549 = vsyncpa [#allocation3 + $0x1], 1 }
 0x170   :  { %550 = vsyncpa [#allocation6], 1 }
 0x171   :  { %552 = vsyncpa [#allocation6 + $0x1], 1 }
 0x172   :  { %553 = vsyncpa [#allocation4], 1 }
 0x173   :  { %555 = vsyncpa [#allocation4 + $0x1], 1 }

</bundles_post_ra>
